<compile_context>
chip_gen: v5e
topology: v5e:2x2
jax: 0.10.0
libtpu: 0.0.40
codegen_flags: <defaults>
</compile_context>

<pallas_src>
import functools

import jax
import jax.numpy as jnp
from jax.experimental import pallas as pl
from jax.experimental.pallas import tpu as pltpu

BN_EPS = 1e-5


def _qnet_kernel(*refs, n_hidden):
    """One batch tile of the folded QNetwork: (n_hidden+1) matmuls + bias, n_hidden ReLUs."""
    x_ref = refs[0]
    out_ref = refs[-1]
    p = refs[1:-1]                                   # [w1, b1, w2, b2, ..., wo, bo]
    h = x_ref[...].astype(jnp.float32)
    for l in range(n_hidden):
        w = p[2 * l][...]                            # bf16
        b = p[2 * l + 1][...]                        # f32
        h = jnp.dot(h.astype(w.dtype), w, preferred_element_type=jnp.float32) + b
        h = jnp.maximum(h, 0.0)
    wo = p[2 * n_hidden][...]
    bo = p[2 * n_hidden + 1][...]
    out = jnp.dot(h.astype(wo.dtype), wo, preferred_element_type=jnp.float32) + bo
    out_ref[...] = out.astype(out_ref.dtype)


def fold_bn_into_linear(params, n_hidden):
    """Fold eval-mode BatchNorm into the preceding Linear. Returns [W1,b1,...,Wo,bo] (f32)."""
    folded = []
    idx = 0
    for _ in range(n_hidden):
        w, b, g, be, m, v = params[idx:idx + 6]
        idx += 6
        scale = g * jax.lax.rsqrt(v + BN_EPS)        # (1, h)
        folded.append(w * scale)                     # (in, h) * (1, h)
        folded.append((b - m) * scale + be)          # (1, h)
    folded.append(params[idx])                       # Wo
    folded.append(params[idx + 1])                   # bo
    return folded


def _round_up(n, m):
    return ((n + m - 1) // m) * m


def _pad_for_lanes(folded, n_hidden):
    """Zero-pad every layer's output dim to a multiple of 128 (lane-dense) and the
    next layer's input dim to match. Zeros are inert through bias/ReLU/matmul."""
    padded = list(folded)
    n_layers = n_hidden + 1
    for l in range(n_layers):
        w, b = padded[2 * l], padded[2 * l + 1]
        out_dim = w.shape[1]
        out_pad = _round_up(out_dim, 128)
        if out_pad != out_dim:
            padded[2 * l] = jnp.pad(w, ((0, 0), (0, out_pad - out_dim)))
            padded[2 * l + 1] = jnp.pad(b, ((0, 0), (0, out_pad - out_dim)))
            if l + 1 < n_layers:
                wn = padded[2 * (l + 1)]
                padded[2 * (l + 1)] = jnp.pad(wn, ((0, out_pad - out_dim), (0, 0)))
    return padded


def qnetwork_forward(x, params, *, tile_b=None):
    """x: (B, state_size) f32. params: raw list from init_params (BN unfolded)."""
    B, state_size = x.shape
    n_hidden = (len(params) - 2) // 6
    action_size = params[-1].shape[-1]

    # Fold BN, make every output dim lane-dense (multiple of 128), cast weights
    # to bf16 (biases stay f32 for the VPU epilogue).
    folded = _pad_for_lanes(fold_bn_into_linear(params, n_hidden), n_hidden)
    operands = []
    for i, p in enumerate(folded):
        operands.append(p.astype(jnp.bfloat16) if i % 2 == 0 else p.astype(jnp.float32))
    out_dim_pad = operands[-1].shape[-1]

    # Batch tiling policy: exactly 2 parallel tiles when the batch allows it
    # (keeps both v7x TensorCores busy; ~0.35us extra step cost is negligible on
    # single-TC v5e/v6e), otherwise a single step. Rows are independent in eval
    # mode, so zero-padded rows are discarded afterwards.
    if tile_b is None:
        base = _round_up(B, 8)
        tile_b = _round_up(pl.cdiv(base, 2), 8) if base >= 16 else base
    else:
        tile_b = _round_up(min(tile_b, _round_up(B, 8)), 8)
    padded_b = _round_up(B, tile_b)
    if padded_b != B:
        x = jnp.pad(x, ((0, padded_b - B), (0, 0)))
    n_tiles = padded_b // tile_b

    # x / out are tiled along the batch; all weights/biases use constant
    # index_maps so they stay VMEM-resident across grid steps (no re-DMA).
    x_spec = pl.BlockSpec((tile_b, state_size), lambda i: (i, 0))
    const_specs = [pl.BlockSpec(p.shape, lambda i: (0, 0)) for p in operands]
    out_spec = pl.BlockSpec((tile_b, out_dim_pad), lambda i: (i, 0))

    # Advisory cost estimate (flops from the padded matmul chain).
    dims = [state_size] + [operands[2 * k].shape[-1] for k in range(n_hidden + 1)]
    flops = 2 * padded_b * sum(dims[i] * dims[i + 1] for i in range(len(dims) - 1))
    bytes_accessed = (4 * padded_b * state_size + 4 * padded_b * out_dim_pad
                      + sum(int(p.size) * p.dtype.itemsize for p in operands))
    cost = pl.CostEstimate(flops=flops, transcendentals=0,
                           bytes_accessed=bytes_accessed)

    out = pl.pallas_call(
        functools.partial(_qnet_kernel, n_hidden=n_hidden),
        out_shape=jax.ShapeDtypeStruct((padded_b, out_dim_pad), jnp.float32),
        grid=(n_tiles,),
        in_specs=[x_spec] + const_specs,
        out_specs=out_spec,
        compiler_params=pltpu.CompilerParams(
            dimension_semantics=("parallel",)),
        cost_estimate=cost,
    )(x, *operands)

    return out[:B, :action_size]


def init_params(key, state_size, action_size, hidden_sizes):
    """Init mimicking PyTorch defaults. Linear weights stored as (in, out).

    BatchNorm: weight=1, bias=0, running_mean ~ small random, running_var ~ 1+small
    (non-trivial values so BN folding is actually exercised).
    """
    params = []
    prev = state_size
    keys = jax.random.split(key, 4 * len(hidden_sizes) + 2)
    ki = 0
    for h in hidden_sizes:
        bound = 1.0 / jnp.sqrt(prev)
        w = jax.random.uniform(keys[ki], (prev, h), jnp.float32, -bound, bound); ki += 1
        b = jax.random.uniform(keys[ki], (1, h), jnp.float32, -bound, bound); ki += 1
        gamma = jnp.ones((1, h), jnp.float32)
        beta = jnp.zeros((1, h), jnp.float32)
        rmean = 0.1 * jax.random.normal(keys[ki], (1, h), jnp.float32); ki += 1
        rvar = 1.0 + 0.1 * jax.random.uniform(keys[ki], (1, h), jnp.float32); ki += 1
        params += [w, b, gamma, beta, rmean, rvar]
        prev = h
    bound = 1.0 / jnp.sqrt(prev)
    wo = jax.random.uniform(keys[ki], (prev, action_size), jnp.float32, -bound, bound); ki += 1
    bo = jax.random.uniform(keys[ki], (1, action_size), jnp.float32, -bound, bound); ki += 1
    params += [wo, bo]
    return params


def reference_forward_f32(x, params):
    """Pure-JAX f32 reference with UNfolded eval-mode BN (ground-truth semantics)."""
    h = x.astype(jnp.float32)
    n_hidden = (len(params) - 2) // 6
    idx = 0
    for _ in range(n_hidden):
        w, b, g, be, m, v = params[idx:idx + 6]
        idx += 6
        h = h @ w + b
        h = (h - m) / jnp.sqrt(v + BN_EPS) * g + be
        h = jnp.maximum(h, 0.0)
    wo, bo = params[idx], params[idx + 1]
    return h @ wo + bo


def reference_forward_bf16_folded(x, params):
    """Pure-JAX reference with the SAME folded-BN / bf16-weight math as the kernel."""
    n_hidden = (len(params) - 2) // 6
    folded = fold_bn_into_linear(params, n_hidden)
    h = x.astype(jnp.float32)
    for l in range(n_hidden):
        w = folded[2 * l].astype(jnp.bfloat16)
        b = folded[2 * l + 1]
        h = jnp.dot(h.astype(jnp.bfloat16), w, preferred_element_type=jnp.float32) + b
        h = jnp.maximum(h, 0.0)
    wo = folded[2 * n_hidden].astype(jnp.bfloat16)
    bo = folded[2 * n_hidden + 1]
    return jnp.dot(h.astype(jnp.bfloat16), wo, preferred_element_type=jnp.float32) + bo


if __name__ == "__main__":
    # Module-default hidden sizes; batch big enough to exercise the 2-tile grid.
    batch = 256
    state_size = 16
    action_size = 8
    hidden_sizes = [256, 128, 64]

    key = jax.random.PRNGKey(0)
    kx, kp = jax.random.split(key)
    x = jax.random.normal(kx, (batch, state_size), dtype=jnp.float32)
    params = init_params(kp, state_size, action_size, hidden_sizes)

    out = qnetwork_forward(x, params)
    out = jax.block_until_ready(out)
    assert out.shape == (batch, action_size), out.shape

    # Tight check vs. a pure-JAX reference using identical folded-bf16 math.
    ref_bf16 = reference_forward_bf16_folded(x, params)
    assert jnp.allclose(out, ref_bf16, atol=1e-3, rtol=1e-3), (
        float(jnp.max(jnp.abs(out - ref_bf16))))

    # Loose check vs. the f32 unfolded ground-truth semantics (bf16 weight cast).
    ref_f32 = reference_forward_f32(x, params)
    assert jnp.allclose(out, ref_f32, atol=3e-2, rtol=3e-2), (
        float(jnp.max(jnp.abs(out - ref_f32))))

    print("KERNEL_OK")
</pallas_src>

<mosaic_0001>
module attributes {stable_mosaic.version = 11 : i64} {
  func.func @_qnet_kernel(%arg0: i32, %arg1: memref<128x16xf32, #tpu.memory_space<vmem>>, %arg2: memref<16x256xbf16, #tpu.memory_space<vmem>>, %arg3: memref<1x256xf32, #tpu.memory_space<vmem>>, %arg4: memref<256x128xbf16, #tpu.memory_space<vmem>>, %arg5: memref<1x128xf32, #tpu.memory_space<vmem>>, %arg6: memref<128x128xbf16, #tpu.memory_space<vmem>>, %arg7: memref<1x128xf32, #tpu.memory_space<vmem>>, %arg8: memref<128x128xbf16, #tpu.memory_space<vmem>>, %arg9: memref<1x128xf32, #tpu.memory_space<vmem>>, %arg10: memref<128x128xf32, #tpu.memory_space<vmem>>) attributes {dimension_semantics = [#tpu.dimension_semantics<parallel>], iteration_bounds = array<i64: 2>, scalar_prefetch = 0 : i64, scratch_operands = 0 : i64, tpu.core_type = #tpu.core_type<tc>, window_params = [{transform_indices = @transform_0, window_bounds = array<i64: 128, 16>}, {pipeline_mode = #tpu.pipeline_mode<synchronous>, transform_indices = @transform_1, window_bounds = array<i64: 16, 256>}, {pipeline_mode = #tpu.pipeline_mode<synchronous>, transform_indices = @transform_2, window_bounds = array<i64: 1, 256>}, {pipeline_mode = #tpu.pipeline_mode<synchronous>, transform_indices = @transform_3, window_bounds = array<i64: 256, 128>}, {pipeline_mode = #tpu.pipeline_mode<synchronous>, transform_indices = @transform_4, window_bounds = array<i64: 1, 128>}, {pipeline_mode = #tpu.pipeline_mode<synchronous>, transform_indices = @transform_5, window_bounds = array<i64: 128, 128>}, {pipeline_mode = #tpu.pipeline_mode<synchronous>, transform_indices = @transform_6, window_bounds = array<i64: 1, 128>}, {pipeline_mode = #tpu.pipeline_mode<synchronous>, transform_indices = @transform_7, window_bounds = array<i64: 128, 128>}, {pipeline_mode = #tpu.pipeline_mode<synchronous>, transform_indices = @transform_8, window_bounds = array<i64: 1, 128>}, {transform_indices = @transform_9, window_bounds = array<i64: 128, 128>}]} {
    %c0 = arith.constant 0 : index
    %c0_0 = arith.constant 0 : index
    %0 = vector.load %arg1[%c0, %c0_0] : memref<128x16xf32, #tpu.memory_space<vmem>>, vector<128x16xf32>
    %c0_1 = arith.constant 0 : index
    %c0_2 = arith.constant 0 : index
    %1 = vector.load %arg2[%c0_1, %c0_2] : memref<16x256xbf16, #tpu.memory_space<vmem>>, vector<16x256xbf16>
    %c0_3 = arith.constant 0 : index
    %c0_4 = arith.constant 0 : index
    %2 = vector.load %arg3[%c0_3, %c0_4] : memref<1x256xf32, #tpu.memory_space<vmem>>, vector<1x256xf32>
    %3 = arith.truncf %0 : vector<128x16xf32> to vector<128x16xbf16>
    %cst = arith.constant dense<0.000000e+00> : vector<128x256xf32>
    %4 = tpu.matmul %3, %1, %cst {dimension_numbers = #tpu.dot_dimension_numbers<[1], [0], [0], [1], [0, 0, 1, 1], [], []>} : vector<128x16xbf16>, vector<16x256xbf16>, vector<128x256xf32> -> vector<128x256xf32>
    %5 = vector.broadcast %2 : vector<1x256xf32> to vector<128x256xf32>
    %6 = arith.addf %4, %5 : vector<128x256xf32>
    %cst_5 = arith.constant 0.000000e+00 : f32
    %7 = vector.broadcast %cst_5 : f32 to vector<128x256xf32>
    %8 = arith.maximumf %6, %7 : vector<128x256xf32>
    %c0_6 = arith.constant 0 : index
    %c0_7 = arith.constant 0 : index
    %9 = vector.load %arg4[%c0_6, %c0_7] : memref<256x128xbf16, #tpu.memory_space<vmem>>, vector<256x128xbf16>
    %c0_8 = arith.constant 0 : index
    %c0_9 = arith.constant 0 : index
    %10 = vector.load %arg5[%c0_8, %c0_9] : memref<1x128xf32, #tpu.memory_space<vmem>>, vector<1x128xf32>
    %11 = arith.truncf %8 : vector<128x256xf32> to vector<128x256xbf16>
    %cst_10 = arith.constant dense<0.000000e+00> : vector<128x128xf32>
    %12 = tpu.matmul %11, %9, %cst_10 {dimension_numbers = #tpu.dot_dimension_numbers<[1], [0], [0], [1], [0, 0, 1, 1], [], []>} : vector<128x256xbf16>, vector<256x128xbf16>, vector<128x128xf32> -> vector<128x128xf32>
    %13 = vector.broadcast %10 : vector<1x128xf32> to vector<128x128xf32>
    %14 = arith.addf %12, %13 : vector<128x128xf32>
    %cst_11 = arith.constant 0.000000e+00 : f32
    %15 = vector.broadcast %cst_11 : f32 to vector<128x128xf32>
    %16 = arith.maximumf %14, %15 : vector<128x128xf32>
    %c0_12 = arith.constant 0 : index
    %c0_13 = arith.constant 0 : index
    %17 = vector.load %arg6[%c0_12, %c0_13] : memref<128x128xbf16, #tpu.memory_space<vmem>>, vector<128x128xbf16>
    %c0_14 = arith.constant 0 : index
    %c0_15 = arith.constant 0 : index
    %18 = vector.load %arg7[%c0_14, %c0_15] : memref<1x128xf32, #tpu.memory_space<vmem>>, vector<1x128xf32>
    %19 = arith.truncf %16 : vector<128x128xf32> to vector<128x128xbf16>
    %cst_16 = arith.constant dense<0.000000e+00> : vector<128x128xf32>
    %20 = tpu.matmul %19, %17, %cst_16 {dimension_numbers = #tpu.dot_dimension_numbers<[1], [0], [0], [1], [0, 0, 1, 1], [], []>} : vector<128x128xbf16>, vector<128x128xbf16>, vector<128x128xf32> -> vector<128x128xf32>
    %21 = vector.broadcast %18 : vector<1x128xf32> to vector<128x128xf32>
    %22 = arith.addf %20, %21 : vector<128x128xf32>
    %cst_17 = arith.constant 0.000000e+00 : f32
    %23 = vector.broadcast %cst_17 : f32 to vector<128x128xf32>
    %24 = arith.maximumf %22, %23 : vector<128x128xf32>
    %c0_18 = arith.constant 0 : index
    %c0_19 = arith.constant 0 : index
    %25 = vector.load %arg8[%c0_18, %c0_19] : memref<128x128xbf16, #tpu.memory_space<vmem>>, vector<128x128xbf16>
    %c0_20 = arith.constant 0 : index
    %c0_21 = arith.constant 0 : index
    %26 = vector.load %arg9[%c0_20, %c0_21] : memref<1x128xf32, #tpu.memory_space<vmem>>, vector<1x128xf32>
    %27 = arith.truncf %24 : vector<128x128xf32> to vector<128x128xbf16>
    %cst_22 = arith.constant dense<0.000000e+00> : vector<128x128xf32>
    %28 = tpu.matmul %27, %25, %cst_22 {dimension_numbers = #tpu.dot_dimension_numbers<[1], [0], [0], [1], [0, 0, 1, 1], [], []>} : vector<128x128xbf16>, vector<128x128xbf16>, vector<128x128xf32> -> vector<128x128xf32>
    %29 = vector.broadcast %26 : vector<1x128xf32> to vector<128x128xf32>
    %30 = arith.addf %28, %29 : vector<128x128xf32>
    %c0_23 = arith.constant 0 : index
    %c0_24 = arith.constant 0 : index
    %31 = vector.load %arg10[%c0_23, %c0_24] : memref<128x128xf32, #tpu.memory_space<vmem>>, vector<128x128xf32>
    tpu.vector_store %arg10[%c0_23, %c0_24], %30 {strides = array<i32>} : memref<128x128xf32, #tpu.memory_space<vmem>>, vector<128x128xf32>,
    return
  }
  func.func @transform_0(%arg0: i32) -> (i32, i32) {
    %c0_i32 = arith.constant 0 : i32
    %c0_i32_0 = arith.constant 0 : i32
    return %arg0, %c0_i32 : i32, i32
  }
  func.func @transform_1(%arg0: i32) -> (i32, i32) {
    %c0_i32 = arith.constant 0 : i32
    %c0_i32_0 = arith.constant 0 : i32
    %c0_i32_1 = arith.constant 0 : i32
    return %c0_i32, %c0_i32_0 : i32, i32
  }
  func.func @transform_2(%arg0: i32) -> (i32, i32) {
    %c0_i32 = arith.constant 0 : i32
    %c0_i32_0 = arith.constant 0 : i32
    %c0_i32_1 = arith.constant 0 : i32
    return %c0_i32, %c0_i32_0 : i32, i32
  }
  func.func @transform_3(%arg0: i32) -> (i32, i32) {
    %c0_i32 = arith.constant 0 : i32
    %c0_i32_0 = arith.constant 0 : i32
    %c0_i32_1 = arith.constant 0 : i32
    return %c0_i32, %c0_i32_0 : i32, i32
  }
  func.func @transform_4(%arg0: i32) -> (i32, i32) {
    %c0_i32 = arith.constant 0 : i32
    %c0_i32_0 = arith.constant 0 : i32
    %c0_i32_1 = arith.constant 0 : i32
    return %c0_i32, %c0_i32_0 : i32, i32
  }
  func.func @transform_5(%arg0: i32) -> (i32, i32) {
    %c0_i32 = arith.constant 0 : i32
    %c0_i32_0 = arith.constant 0 : i32
    %c0_i32_1 = arith.constant 0 : i32
    return %c0_i32, %c0_i32_0 : i32, i32
  }
  func.func @transform_6(%arg0: i32) -> (i32, i32) {
    %c0_i32 = arith.constant 0 : i32
    %c0_i32_0 = arith.constant 0 : i32
    %c0_i32_1 = arith.constant 0 : i32
    return %c0_i32, %c0_i32_0 : i32, i32
  }
  func.func @transform_7(%arg0: i32) -> (i32, i32) {
    %c0_i32 = arith.constant 0 : i32
    %c0_i32_0 = arith.constant 0 : i32
    %c0_i32_1 = arith.constant 0 : i32
    return %c0_i32, %c0_i32_0 : i32, i32
  }
  func.func @transform_8(%arg0: i32) -> (i32, i32) {
    %c0_i32 = arith.constant 0 : i32
    %c0_i32_0 = arith.constant 0 : i32
    %c0_i32_1 = arith.constant 0 : i32
    return %c0_i32, %c0_i32_0 : i32, i32
  }
  func.func @transform_9(%arg0: i32) -> (i32, i32) {
    %c0_i32 = arith.constant 0 : i32
    %c0_i32_0 = arith.constant 0 : i32
    return %arg0, %c0_i32 : i32, i32
  }
}

</mosaic_0001>

<bundles_post_ra>
// kernel: tpu_custom_call.1
= control target key start
LH: loop header
LB: loop body
LE: loop exit
PB: predicated region body
PF: predicated region fallthrough
CT: control target
= control target key end

     0   :  { %14 = vsyncpa [#allocation3], 0  ;;  %s1838_s0 = inlined_call_operand.vmem [shape: f32[256,16], index: 0, kind: input, shape index: {}]   ;;  %s1839_s1 = inlined_call_operand.vmem [shape: bf16[16,256], index: 1, kind: input, shape index: {}]   ;;  %s1840_s2 = inlined_call_operand.vmem [shape: f32[1,256], index: 2, kind: input, shape index: {}]   ;;  %s1841_s3 = inlined_call_operand.vmem [shape: bf16[256,128], index: 3, kind: input, shape index: {}]   ;;  %s1842_s4 = inlined_call_operand.vmem [shape: f32[1,128], index: 4, kind: input, shape index: {}]   ;;  %s1843_s5 = inlined_call_operand.vmem [shape: bf16[128,128], index: 5, kind: input, shape index: {}]   ;;  %s1844_s6 = inlined_call_operand.vmem [shape: f32[1,128], index: 6, kind: input, shape index: {}]   ;;  %s1845_s7 = inlined_call_operand.vmem [shape: bf16[128,128], index: 7, kind: input, shape index: {}]   ;;  %s1846_s8 = inlined_call_operand.vmem [shape: f32[1,128], index: 8, kind: input, shape index: {}]   ;;  %s1847_s9 = inlined_call_operand.hbm [shape: f32[256,128], index: 9, kind: output, shape index: {}]  }
   0x1   :  { %16 = vsyncpa [#allocation3 + $0x1], 0  ;;  %s1523_s30 = smov 0   ;;  %s1525_s10 = smov 0  }
   0x2   :  { %s1527_s11 = smov 0   ;;  %s1529_s12 = smov 0  }
   0x3 LB: > { %s1544_s13 = sadd.s32 4294967295, %s1469_s12   ;;  %s1154_s14 = sadd.s32 4294967294, %s1469_s12   ;;  %s1469_s12 = sphi %s1529_s12, %s1853_s12   ;;  %s1465_s11 = sphi %s1527_s11, %s1852_s11   ;;  %s1461_s10 = sphi %s1525_s10, %s1851_s10   ;;  %s1457_s30 = sphi %s1523_s30, %s1850_s30  }
   0x4   : > { %s1548_s15 = sadd.s32 1, %s1469_s12   ;;  %s223_s16 = sadd.s32 1, %s1465_s11 }
   0x5   : > { %s220_s17 = ssub.s32 %s1469_s12, %s1548_s15  ;;  %p233_p0 = scmp.ne.s32.totalorder %s1465_s11, %s1461_s10 }
   0x6   : > { %p221_p1 = scmp.eq.s32.totalorder %s220_s17, 0  ;;  %p234_p2 = scmp.eq.s32.totalorder %s1544_s13, 1 }
   0x7   : > { %p239_p3 = scmp.ne.s32.totalorder %s1461_s10, %s1457_s30  ;;  %p240_p4 = scmp.eq.s32.totalorder %s1154_s14, 1 }
   0x8   : > { %s1559_s18 = scalar_select %p221_p1, %s1465_s11, %s223_s16  }
   0x9   : > { %p1561_p5 = por %p234_p2, %p233_p0  ;;  %p1565_p6 = por %p240_p4, %p239_p3 }
   0xa   : > { %p1157_p7 = scmp.ge.s32.totalorder %s1469_s12, 1  ;;  %p291_p8 = scmp.lt.s32.totalorder %s1469_s12, 3 }
   0xc   : > { %p292_p9 = pnand %p1157_p7, %p291_p8 }
   0xd   : > { %s1159_s29 = sshll.u32 (!%p292_p9), %s1544_s13, 4  ;;  %s324_s22 = sand.u32 (!%p292_p9), 1, %s1461_s10  }
   0xe   : > { %295 = sbr.rel (%p292_p9) target bundleno = 712 (0x2c8), region = 56  ;;  %p328_p10 = scmp.lt.s32.totalorder (!%p292_p9), %s1159_s29, 31 }
   0xf   : > { %s1158_s23 = sshll.u32 (!%p292_p9), %s324_s22, 7  ;;  %s1352_s27 = sshll.u32 (!%p292_p9), %s1544_s13, 7 }
  0x10   : > { %s1786_s26 = scalar_lea.vmem (!%p292_p9), [#allocation2], %s1158_s23  ;;  %s1077_s17 = scalar_lea.sflag (!%p292_p9), [#allocation3], %s324_s22 }
  0x13   : > { %v1163_v0 = vld [vmem:[%s1839_s1] sm:$0xf]  ;;  %v1319_v1 = vld [vmem:[%s1839_s1 + $0x4] sm:$0xf0]  ;;  %v1318_v2 = vld [vmem:[%s1839_s1 + $0x4] sm:$0xf] }
  0x14   : > { %v1164_v3 = vor.u32 %v1319_v1, %v1163_v0  ;;  %v1165_v4 = vld [vmem:[%s1839_s1 + $0x8] sm:$0xf0]  ;;  %s1855_s29 = smov (!%p328_p10, %s1159_s29), 31  ;;  %vm377_vm0 = vcmask 130048   ;;  %v1335_v21 = vld [vmem:[%s1841_s3 + $0x78] sm:$0xff]  ;;  %v1334_v23 = vld [vmem:[%s1841_s3 + $0x70] sm:$0xff] }
  0x15   : > { %v1168_v5 = vor.u32 %v1318_v2, %v1165_v4  ;;  %s1160_s14 = sshll.u32 %s1855_s29, 3  ;;  %v1327_v22 = vld [vmem:[%s1841_s3 + $0x38] sm:$0xff]  ;;  %v1326_v24 = vld [vmem:[%s1841_s3 + $0x30] sm:$0xff]  ;;  %v1333_v25 = vld [vmem:[%s1841_s3 + $0x68] sm:$0xff] }
  0x16   : > { %409 = vmatpush.bf16.msra.mxu0 %v1164_v3  ;;  %1353 = vmatpush.bf16.msra.mxu2 %v1164_v3  ;;  %s1587_s21 = scalar_lea.vmem %s1838_s0, %s1160_s14  ;;  %v1325_v26 = vld [vmem:[%s1841_s3 + $0x28] sm:$0xff]  ;;  %v1332_v29 = vld [vmem:[%s1841_s3 + $0x60] sm:$0xff]  ;;  %v1331_v35 = vld [vmem:[%s1841_s3 + $0x58] sm:$0xff]  ;;  %s1089_s14 = sshll.u32 %s1786_s26, 4  ;;  %s1090_s14 = int_to_ptr.vmem [resolvable:$true] %s1089_s14 }
  0x17   : > { %458 = vmatpush.bf16.msra.mxu1 %v1168_v5  ;;  %1354 = vmatpush.bf16.msra.mxu3 %v1168_v5  ;;  %v335_v6 = vld [vmem:[%s1587_s21] sm:$0xff]  ;;  %v336_v7 = vld [vmem:[%s1587_s21 + $0x8] sm:$0xff]  ;;  %v337_v9 = vld [vmem:[%s1587_s21 + $0x10] sm:$0xff] }
  0x18   : > { %v354_v8 = vpack.c.bf16 %v336_v7, %v335_v6  ;;  %v338_v10 = vld [vmem:[%s1587_s21 + $0x18] sm:$0xff]  ;;  %v343_v12 = vld [vmem:[%s1587_s21 + $0x40] sm:$0xff]  ;;  %v344_v13 = vld [vmem:[%s1587_s21 + $0x48] sm:$0xff] }
  0x19   : > { %v355_v11 = vpack.c.bf16 %v338_v10, %v337_v9  ;;  %v358_v14 = vpack.c.bf16 %v344_v13, %v343_v12  ;;  %v339_v15 = vld [vmem:[%s1587_s21 + $0x20] sm:$0xff]  ;;  %v340_v16 = vld [vmem:[%s1587_s21 + $0x28] sm:$0xff]  ;;  %v345_v18 = vld [vmem:[%s1587_s21 + $0x50] sm:$0xff] }
  0x1a   : > { %1169 = vmatmul.msk.bf16.vlgmr.msra.gmra.mxu0 %vm377_vm0, %v354_v8  ;;  %1177 = vmatmul.msk.bf16.vlgmr.msra.gmra.mxu1 %vm377_vm0, %v354_v8  ;;  %v356_v17 = vpack.c.bf16 %v340_v16, %v339_v15  ;;  %v346_v19 = vld [vmem:[%s1587_s21 + $0x58] sm:$0xff]  ;;  %v341_v27 = vld [vmem:[%s1587_s21 + $0x30] sm:$0xff]  ;;  %v347_v30 = vld [vmem:[%s1587_s21 + $0x60] sm:$0xff] }
  0x1b   : > { %1181 = vmatmul.msk.bf16.vlgmr.msra.gmra.mxu3 %vm377_vm0, %v358_v14  ;;  %v359_v20 = vpack.c.bf16 %v346_v19, %v345_v18  ;;  %680 = vmatpush.bf16.msrb.mxu2 %v1327_v22  ;;  %v342_v28 = vld [vmem:[%s1587_s21 + $0x38] sm:$0xff]  ;;  %v348_v31 = vld [vmem:[%s1587_s21 + $0x68] sm:$0xff]  ;;  %v1324_v32 = vld [vmem:[%s1841_s3 + $0x20] sm:$0xff] }
  0x1c   : > { %729 = vmatpush.bf16.msrb.mxu3 %v1335_v21  ;;  %v357_v33 = vpack.c.bf16 %v342_v28, %v341_v27  ;;  %v360_v34 = vpack.c.bf16 %v348_v31, %v347_v30  ;;  %v1323_v36 = vld [vmem:[%s1841_s3 + $0x18] sm:$0xff]  ;;  %v1330_v37 = vld [vmem:[%s1841_s3 + $0x50] sm:$0xff]  ;;  %v1329_v42 = vld [vmem:[%s1841_s3 + $0x48] sm:$0xff] }
  0x1d   : > { %1174 = vmatmul.msk.bf16.vlgmr.msra.gmra.mxu2 %vm377_vm0, %v359_v20  ;;  %v1322_v38 = vld [vmem:[%s1841_s3 + $0x10] sm:$0xff]  ;;  %v350_v40 = vld [vmem:[%s1587_s21 + $0x78] sm:$0xff]  ;;  %v1321_v43 = vld [vmem:[%s1841_s3 + $0x8] sm:$0xff] }
  0x1e   : > { %v349_v39 = vld [vmem:[%s1587_s21 + $0x70] sm:$0xff]  ;;  %v1320_v44 = vld [vmem:[%s1841_s3] sm:$0xff]  ;;  %v1343_v28 = vld [vmem:[%s1843_s5 + $0x38] sm:$0xff]  ;;  %s1088_s21 = scalar_lea.hbm %s1847_s9, %s1352_s27  ;;  %s1427_s27 = scalar_lea.hbm %s1847_s9, 256 }
  0x1f   : > { %681 = vmatpush.bf16.msrb.mxu2 %v1326_v24  ;;  %v361_v41 = vpack.c.bf16 %v350_v40, %v349_v39  ;;  %v1328_v45 = vld [vmem:[%s1841_s3 + $0x40] sm:$0xff]  ;;  %870 = vmatpush.bf16.msrb.mxu0 %v1343_v28  ;;  %s1091_s16 = sshll.u32 %s1088_s21, 4  ;;  %s1092_s16 = int_to_ptr.hbm [resolvable:$true] %s1091_s16 }
  0x20   : > { %730 = vmatpush.bf16.msrb.mxu3 %v1334_v23  ;;  %v353_v46 = vld [vmem:[%s1840_s2] sm:$0x3]  ;;  %s1421_s23 = sshra.s32 %s1092_s16, 4  ;;  %s1422_s23 = int_to_ptr.hbm [resolvable:$true] %s1421_s23 }
  0x21   : > { %v1672_v49 = vperm.slane %v353_v46, 0  ;;  %v1674_v50 = vperm.slane %v353_v46, 1  ;;  %s1423_s13 = scalar_lea.hbm %s1422_s23, 128  ;;  %p1428_p0 = scmp.lt.s32.totalorder %s1422_s23, %s1847_s9 }
  0x22   : > { %p1424_p11 = scmp.ne.s32.totalorder %s1422_s23, %s1423_s13  ;;  %p1429_p1 = scmp.lt.s32.totalorder %s1427_s27, %s1423_s13 }
  0x23   : > { %682 = vmatpush.bf16.msrb.mxu2 %v1325_v26 }
  0x24   : > { %731 = vmatpush.bf16.msrb.mxu3 %v1333_v25  ;;  %p1425_p12 = pnand %p1424_p11, %p1561_p5  ;;  %p1430_p2 = por %p1429_p1, %p1428_p0 }
  0x26   : > { %p1426_p13 = pneg %p1425_p12 }
  0x27   : > { %683 = vmatpush.bf16.msrb.mxu2 %v1324_v32 }
  0x28   : > { %732 = vmatpush.bf16.msrb.mxu3 %v1332_v29  ;;  %p1431_p3 = pnand %p1430_p2, %p1426_p13 }
  0x2a   : > { %1170 = vmatmul.msk.bf16.gmra.mxu0 %vm377_vm0, %v355_v11  ;;  %1178 = vmatmul.msk.bf16.gmra.mxu1 %vm377_vm0, %v355_v11 }
  0x2b   : > { %1182 = vmatmul.msk.bf16.gmra.mxu3 %vm377_vm0, %v359_v20  ;;  %684 = vmatpush.bf16.msrb.mxu2 %v1323_v36 }
  0x2c   : > { %733 = vmatpush.bf16.msrb.mxu3 %v1331_v35 }
  0x2d   : > { %1175 = vmatmul.msk.bf16.gmra.mxu2 %vm377_vm0, %v360_v34 }
  0x2f   : > { %685 = vmatpush.bf16.msrb.mxu2 %v1322_v38 }
  0x30   : > { %734 = vmatpush.bf16.msrb.mxu3 %v1330_v37 }
  0x33   : > { %686 = vmatpush.bf16.msrb.mxu2 %v1321_v43 }
  0x34   : > { %735 = vmatpush.bf16.msrb.mxu3 %v1329_v42 }
  0x37   : > { %687 = vmatpush.bf16.msrb.mxu2 %v1320_v44 }
  0x38   : > { %736 = vmatpush.bf16.msrb.mxu3 %v1328_v45  ;;  %v1342_v45 = vld [vmem:[%s1843_s5 + $0x30] sm:$0xff] }
  0x39   : > { %871 = vmatpush.bf16.msrb.mxu0 %v1342_v45 }
  0x3a   : > { %1171 = vmatmul.msk.bf16.gmra.mxu0 %vm377_vm0, %v356_v17  ;;  %1179 = vmatmul.msk.bf16.gmra.mxu1 %vm377_vm0, %v356_v17 }
  0x3b   : > { %1183 = vmatmul.msk.bf16.gmra.mxu3 %vm377_vm0, %v360_v34  ;;  %1355 = vmatpush.bf16.msra.mxu2 %v1343_v28 }
  0x3d   : > { %1176 = vmatmul.msk.bf16.gmra.mxu2 %vm377_vm0, %v361_v41 }
  0x3f   : > { %1356 = vmatpush.bf16.msra.mxu2 %v1342_v45 }
  0x4a   : > { %1172 = vmatmul.msk.bf16.gmra.mxu0 %vm377_vm0, %v357_v33  ;;  %1180 = vmatmul.msk.bf16.gmra.mxu1 %vm377_vm0, %v357_v33 }
  0x4b   : > { %1184 = vmatmul.msk.bf16.gmra.mxu3 %vm377_vm0, %v361_v41 }
  0x5a   : > { %1173 = vmatmul.msk.bf16.gmra.mxu0 %vm377_vm0, %v358_v14 }
  0x97   : > { %v411_v47 = vpop.f32.mrf.mxu0  ;;  %v460_v48 = vpop.f32.mrf.mxu1 }
  0x98   : > { %v412_v51 = vadd.f32 %v411_v47, %v1672_v49  ;;  %v461_v52 = vadd.f32 %v460_v48, %v1674_v50  ;;  %v1341_v48 = vld [vmem:[%s1843_s5 + $0x28] sm:$0xff] }
  0x99   : > { %872 = vmatpush.bf16.msrb.mxu0 %v1341_v48  ;;  %1357 = vmatpush.bf16.msra.mxu2 %v1341_v48 }
  0x9a   : > { %v500_v57 = vmax.f32 %v412_v51, 0.0  ;;  %v501_v58 = vmax.f32 %v461_v52, 0.0 }
  0x9e   : > { %v480_v25 = vpop.f32.mrf.mxu3 }
  0x9f   : > { %v413_v53 = vpop.f32.mrf.mxu0  ;;  %v462_v54 = vpop.f32.mrf.mxu1  ;;  %v481_v51 = vadd.f32 %v480_v25, %v1674_v50 }
  0xa0   : > { %v414_v55 = vadd.f32 %v413_v53, %v1672_v49  ;;  %v463_v56 = vadd.f32 %v462_v54, %v1674_v50  ;;  %v436_v44 = vpop.f32.mrf.mxu2 }
  0xa2   : > { %v502_v59 = vmax.f32 %v414_v55, 0.0  ;;  %v503_v60 = vmax.f32 %v463_v56, 0.0  ;;  %v517_v55 = vmax.f32 %v481_v51, 0.0 }
  0xa4   : > { %v565_v61 = vpack.c.bf16 %v502_v59, %v500_v57  ;;  %v566_v62 = vpack.c.bf16 %v503_v60, %v501_v58 }
  0xa6   : > { %688 = vmatmul.bf16.vlgmr.msrb.gmra.mxu2 %v565_v61  ;;  %737 = vmatmul.bf16.vlgmr.msrb.gmra.mxu3 %v566_v62  ;;  %v482_v31 = vpop.f32.mrf.mxu3 }
  0xa7   : > { %v416_v63 = vpop.f32.mrf.mxu0  ;;  %v465_v0 = vpop.f32.mrf.mxu1  ;;  %v483_v52 = vadd.f32 %v482_v31, %v1674_v50 }
  0xa8   : > { %v417_v1 = vadd.f32 %v416_v63, %v1672_v49  ;;  %v466_v2 = vadd.f32 %v465_v0, %v1674_v50  ;;  %v438_v58 = vpop.f32.mrf.mxu2  ;;  %v1340_v0 = vld [vmem:[%s1843_s5 + $0x20] sm:$0xff] }
  0xa9   : > { %v519_v56 = vmax.f32 %v483_v52, 0.0  ;;  %873 = vmatpush.bf16.msrb.mxu0 %v1340_v0  ;;  %1358 = vmatpush.bf16.msra.mxu2 %v1340_v0 }
  0xaa   : > { %v504_v7 = vmax.f32 %v417_v1, 0.0  ;;  %v505_v8 = vmax.f32 %v466_v2, 0.0 }
  0xab   : > { %v574_v63 = vpack.c.bf16 %v519_v56, %v517_v55 }
  0xae   : > { %v485_v47 = vpop.f32.mrf.mxu3 }
  0xaf   : > { %v418_v3 = vpop.f32.mrf.mxu0  ;;  %v467_v4 = vpop.f32.mrf.mxu1 }
  0xb0   : > { %v419_v5 = vadd.f32 %v418_v3, %v1672_v49  ;;  %v468_v6 = vadd.f32 %v467_v4, %v1674_v50  ;;  %v441_v1 = vpop.f32.mrf.mxu2  ;;  %v437_v3 = vadd.f32 %v436_v44, %v1672_v49  ;;  %v486_v4 = vadd.f32 %v485_v47, %v1674_v50 }
  0xb2   : > { %v506_v9 = vmax.f32 %v419_v5, 0.0  ;;  %v507_v10 = vmax.f32 %v468_v6, 0.0  ;;  %v439_v5 = vadd.f32 %v438_v58, %v1672_v49 }
  0xb4   : > { %v567_v11 = vpack.c.bf16 %v506_v9, %v504_v7  ;;  %v568_v12 = vpack.c.bf16 %v507_v10, %v505_v8  ;;  %v520_v7 = vmax.f32 %v437_v3, 0.0  ;;  %v521_v8 = vmax.f32 %v486_v4, 0.0 }
  0xb5   : > { %v522_v9 = vmax.f32 %v439_v5, 0.0 }
  0xb6   : > { %693 = vmatmul.bf16.gmra.mxu2 %v567_v11  ;;  %742 = vmatmul.bf16.gmra.mxu3 %v568_v12  ;;  %v487_v59 = vpop.f32.mrf.mxu3 }
  0xb7   : > { %v421_v13 = vpop.f32.mrf.mxu0  ;;  %v470_v14 = vpop.f32.mrf.mxu1  ;;  %v488_v6 = vadd.f32 %v487_v59, %v1674_v50  ;;  %v575_v11 = vpack.c.bf16 %v522_v9, %v520_v7 }
  0xb8   : > { %v422_v15 = vadd.f32 %v421_v13, %v1672_v49  ;;  %v471_v16 = vadd.f32 %v470_v14, %v1674_v50  ;;  %v443_v13 = vpop.f32.mrf.mxu2 }
  0xb9   : > { %v523_v10 = vmax.f32 %v488_v6, 0.0 }
  0xba   : > { %v508_v21 = vmax.f32 %v422_v15, 0.0  ;;  %v509_v22 = vmax.f32 %v471_v16, 0.0  ;;  %v1339_v15 = vld [vmem:[%s1843_s5 + $0x18] sm:$0xff]  ;;  %v1338_v16 = vld [vmem:[%s1843_s5 + $0x10] sm:$0xff] }
  0xbb   : > { %v576_v12 = vpack.c.bf16 %v523_v10, %v521_v8  ;;  %874 = vmatpush.bf16.msrb.mxu0 %v1339_v15  ;;  %1359 = vmatpush.bf16.msra.mxu2 %v1339_v15 }
  0xbe   : > { %v490_v2 = vpop.f32.mrf.mxu3 }
  0xbf   : > { %v423_v17 = vpop.f32.mrf.mxu0  ;;  %v472_v18 = vpop.f32.mrf.mxu1  ;;  %875 = vmatpush.bf16.msrb.mxu0 %v1338_v16  ;;  %1360 = vmatpush.bf16.msra.mxu2 %v1338_v16 }
  0xc0   : > { %v424_v19 = vadd.f32 %v423_v17, %v1672_v49  ;;  %v473_v20 = vadd.f32 %v472_v18, %v1674_v50  ;;  %v442_v17 = vadd.f32 %v441_v1, %v1672_v49  ;;  %v491_v18 = vadd.f32 %v490_v2, %v1674_v50 }
  0xc2   : > { %v510_v23 = vmax.f32 %v424_v19, 0.0  ;;  %v511_v24 = vmax.f32 %v473_v20, 0.0  ;;  %v444_v19 = vadd.f32 %v443_v13, %v1672_v49 }
  0xc4   : > { %v569_v26 = vpack.c.bf16 %v510_v23, %v508_v21  ;;  %v570_v27 = vpack.c.bf16 %v511_v24, %v509_v22  ;;  %v446_v21 = vpop.f32.mrf.mxu2  ;;  %v524_v23 = vmax.f32 %v442_v17, 0.0  ;;  %v525_v24 = vmax.f32 %v491_v18, 0.0 }
  0xc5   : > { %v526_v25 = vmax.f32 %v444_v19, 0.0  ;;  %v447_v31 = vadd.f32 %v446_v21, %v1672_v49 }
  0xc6   : > { %698 = vmatmul.bf16.gmra.mxu2 %v569_v26  ;;  %747 = vmatmul.bf16.gmra.mxu3 %v570_v27  ;;  %v492_v14 = vpop.f32.mrf.mxu3 }
  0xc7   : > { %v426_v29 = vpop.f32.mrf.mxu0  ;;  %v475_v30 = vpop.f32.mrf.mxu1  ;;  %v493_v20 = vadd.f32 %v492_v14, %v1674_v50  ;;  %v577_v27 = vpack.c.bf16 %v526_v25, %v524_v23 }
  0xc8   : > { %v427_v32 = vadd.f32 %v426_v29, %v1672_v49  ;;  %v476_v33 = vadd.f32 %v475_v30, %v1674_v50 }
  0xc9   : > { %v527_v26 = vmax.f32 %v493_v20, 0.0 }
  0xca   : > { %v512_v38 = vmax.f32 %v427_v32, 0.0  ;;  %v513_v39 = vmax.f32 %v476_v33, 0.0 }
  0xcb   : > { %v578_v28 = vpack.c.bf16 %v527_v26, %v525_v24 }
  0xcc   : > { %v448_v29 = vpop.f32.mrf.mxu2 }
  0xcd   : > { %v449_v33 = vadd.f32 %v448_v29, %v1672_v49 }
  0xce   : > { %v495_v22 = vpop.f32.mrf.mxu3 }
  0xcf   : > { %v428_v34 = vpop.f32.mrf.mxu0  ;;  %v477_v35 = vpop.f32.mrf.mxu1  ;;  %v496_v32 = vadd.f32 %v495_v22, %v1674_v50 }
  0xd0   : > { %v429_v36 = vadd.f32 %v428_v34, %v1672_v49  ;;  %v478_v37 = vadd.f32 %v477_v35, %v1674_v50  ;;  %v1337_v35 = vld [vmem:[%s1843_s5 + $0x8] sm:$0xff] }
  0xd1   : > { %876 = vmatpush.bf16.msrb.mxu0 %v1337_v35  ;;  %1361 = vmatpush.bf16.msra.mxu2 %v1337_v35  ;;  %v1350_v35 = vld [vmem:[%s1845_s7 + $0x30] sm:$0xff] }
  0xd2   : > { %v514_v40 = vmax.f32 %v429_v36, 0.0  ;;  %v515_v41 = vmax.f32 %v478_v37, 0.0  ;;  %v528_v36 = vmax.f32 %v447_v31, 0.0  ;;  %v529_v37 = vmax.f32 %v496_v32, 0.0 }
  0xd4   : > { %v571_v42 = vpack.c.bf16 %v514_v40, %v512_v38  ;;  %v572_v43 = vpack.c.bf16 %v515_v41, %v513_v39  ;;  %v530_v38 = vmax.f32 %v449_v33, 0.0 }
  0xd6   : > { %703 = vmatmul.bf16.gmra.mxu2 %v571_v42  ;;  %752 = vmatmul.bf16.gmra.mxu3 %v572_v43  ;;  %v497_v30 = vpop.f32.mrf.mxu3  ;;  %v579_v40 = vpack.c.bf16 %v530_v38, %v528_v36  ;;  %v1336_v42 = vld [vmem:[%s1843_s5] sm:$0xff] }
  0xd7   : > { %v431_v46 = vpop.f32.mrf.mxu0  ;;  %v498_v34 = vadd.f32 %v497_v30, %v1674_v50  ;;  %877 = vmatpush.bf16.msrb.mxu0 %v1336_v42  ;;  %1362 = vmatpush.bf16.msra.mxu2 %v1336_v42  ;;  %v1735_v43 = vld [vmem:[%s1842_s4] ss:$0 sm:$0xff] }
  0xd8   : > { %v432_v53 = vadd.f32 %v431_v46, %v1672_v49 }
  0xd9   : > { %v531_v39 = vmax.f32 %v498_v34, 0.0 }
  0xda   : > { %v516_v60 = vmax.f32 %v432_v53, 0.0 }
  0xdb   : > { %v580_v41 = vpack.c.bf16 %v531_v39, %v529_v37 }
  0xdf   : > { %v433_v54 = vpop.f32.mrf.mxu0 }
  0xe0   : > { %v434_v57 = vadd.f32 %v433_v54, %v1672_v49 }
  0xe2   : > { %v518_v61 = vmax.f32 %v434_v57, 0.0 }
  0xe4   : > { %v573_v62 = vpack.c.bf16 %v518_v61, %v516_v60 }
  0xe6   : > { %708 = vmatmul.bf16.gmra.mxu2 %v573_v62  ;;  %757 = vmatmul.bf16.gmra.mxu3 %v574_v63 }
  0xf6   : > { %713 = vmatmul.bf16.gmra.mxu2 %v575_v11  ;;  %762 = vmatmul.bf16.gmra.mxu3 %v576_v12 }
 0x106   : > { %718 = vmatmul.bf16.gmra.mxu2 %v577_v27  ;;  %767 = vmatmul.bf16.gmra.mxu3 %v578_v28  ;;  %v1351_v27 = vld [vmem:[%s1845_s7 + $0x38] sm:$0xff] }
 0x107   : > { %1011 = vmatpush.bf16.msrb.mxu1 %v1351_v27 }
 0x10b   : > { %1012 = vmatpush.bf16.msrb.mxu1 %v1350_v35 }
 0x116   : > { %723 = vmatmul.bf16.gmra.mxu2 %v579_v40  ;;  %772 = vmatmul.bf16.gmra.mxu3 %v580_v41  ;;  %v1349_v40 = vld [vmem:[%s1845_s7 + $0x28] sm:$0xff] }
 0x117   : > { %1013 = vmatpush.bf16.msrb.mxu1 %v1349_v40 }
 0x129   : > { %v689_v49 = vpop.f32.mrf.mxu2  ;;  %v738_v50 = vpop.f32.mrf.mxu3 }
 0x12a   : > { %v690_v44 = vadd.f32 %v1735_v43, %v689_v49 }
 0x12c   : > { %v739_v47 = vadd.f32 %v738_v50, %v690_v44 }
 0x12e   : > { %v778_v52 = vmax.f32 %v739_v47, 0.0 }
 0x131   : > { %v691_v45 = vpop.f32.mrf.mxu2  ;;  %v740_v46 = vpop.f32.mrf.mxu3 }
 0x132   : > { %v692_v48 = vadd.f32 %v1735_v43, %v691_v45 }
 0x134   : > { %v741_v51 = vadd.f32 %v740_v46, %v692_v48  ;;  %v1348_v48 = vld [vmem:[%s1845_s7 + $0x20] sm:$0xff] }
 0x135   : > { %1014 = vmatpush.bf16.msrb.mxu1 %v1348_v48 }
 0x136   : > { %v779_v53 = vmax.f32 %v741_v51, 0.0 }
 0x138   : > { %v811_v54 = vpack.c.bf16 %v779_v53, %v778_v52  ;;  %v1347_v53 = vld [vmem:[%s1845_s7 + $0x18] sm:$0xff] }
 0x139   : > { %v694_v55 = vpop.f32.mrf.mxu2  ;;  %v743_v56 = vpop.f32.mrf.mxu3  ;;  %1015 = vmatpush.bf16.msrb.mxu1 %v1347_v53 }
 0x13a   : > { %878 = vmatmul.bf16.vlgmr.msrb.gmra.mxu0 %v811_v54  ;;  %v695_v57 = vadd.f32 %v1735_v43, %v694_v55  ;;  %v1346_v55 = vld [vmem:[%s1845_s7 + $0x10] sm:$0xff] }
 0x13c   : > { %v744_v60 = vadd.f32 %v743_v56, %v695_v57 }
 0x13d   : > { %1016 = vmatpush.bf16.msrb.mxu1 %v1346_v55 }
 0x13e   : > { %v780_v63 = vmax.f32 %v744_v60, 0.0 }
 0x141   : > { %v696_v58 = vpop.f32.mrf.mxu2  ;;  %v745_v59 = vpop.f32.mrf.mxu3 }
 0x142   : > { %v697_v61 = vadd.f32 %v1735_v43, %v696_v58 }
 0x144   : > { %v746_v62 = vadd.f32 %v745_v59, %v697_v61 }
 0x146   : > { %v781_v0 = vmax.f32 %v746_v62, 0.0 }
 0x148   : > { %v812_v1 = vpack.c.bf16 %v781_v0, %v780_v63 }
 0x149   : > { %v699_v2 = vpop.f32.mrf.mxu2  ;;  %v748_v3 = vpop.f32.mrf.mxu3 }
 0x14a   : > { %883 = vmatmul.bf16.gmra.mxu0 %v812_v1  ;;  %v700_v4 = vadd.f32 %v1735_v43, %v699_v2  ;;  %v1345_v2 = vld [vmem:[%s1845_s7 + $0x8] sm:$0xff] }
 0x14b   : > { %1017 = vmatpush.bf16.msrb.mxu1 %v1345_v2 }
 0x14c   : > { %v749_v7 = vadd.f32 %v748_v3, %v700_v4 }
 0x14e   : > { %v782_v10 = vmax.f32 %v749_v7, 0.0 }
 0x151   : > { %v701_v5 = vpop.f32.mrf.mxu2  ;;  %v750_v6 = vpop.f32.mrf.mxu3 }
 0x152   : > { %v702_v8 = vadd.f32 %v1735_v43, %v701_v5  ;;  %v1344_v5 = vld [vmem:[%s1845_s7] sm:$0xff] }
 0x153   : > { %1018 = vmatpush.bf16.msrb.mxu1 %v1344_v5 }
 0x154   : > { %v751_v9 = vadd.f32 %v750_v6, %v702_v8 }
 0x156   : > { %v783_v11 = vmax.f32 %v751_v9, 0.0 }
 0x158   : > { %v813_v12 = vpack.c.bf16 %v783_v11, %v782_v10 }
 0x159   : > { %v704_v13 = vpop.f32.mrf.mxu2  ;;  %v753_v14 = vpop.f32.mrf.mxu3 }
 0x15a   : > { %888 = vmatmul.bf16.gmra.mxu0 %v813_v12  ;;  %v705_v15 = vadd.f32 %v1735_v43, %v704_v13 }
 0x15c   : > { %v754_v18 = vadd.f32 %v753_v14, %v705_v15  ;;  %v1405_v14 = vld [vmem:[%s1844_s6] ss:$0 sm:$0xff] }
 0x15e   : > { %v784_v21 = vmax.f32 %v754_v18, 0.0 }
 0x161   : > { %v706_v16 = vpop.f32.mrf.mxu2  ;;  %v755_v17 = vpop.f32.mrf.mxu3 }
 0x162   : > { %v707_v19 = vadd.f32 %v1735_v43, %v706_v16 }
 0x164   : > { %v756_v20 = vadd.f32 %v755_v17, %v707_v19 }
 0x166   : > { %v785_v22 = vmax.f32 %v756_v20, 0.0 }
 0x168   : > { %v814_v23 = vpack.c.bf16 %v785_v22, %v784_v21 }
 0x169   : > { %v709_v24 = vpop.f32.mrf.mxu2  ;;  %v758_v25 = vpop.f32.mrf.mxu3 }
 0x16a   : > { %893 = vmatmul.bf16.gmra.mxu0 %v814_v23  ;;  %v710_v26 = vadd.f32 %v1735_v43, %v709_v24 }
 0x16c   : > { %v759_v30 = vadd.f32 %v758_v25, %v710_v26 }
 0x16e   : > { %v786_v33 = vmax.f32 %v759_v30, 0.0 }
 0x171   : > { %v711_v28 = vpop.f32.mrf.mxu2  ;;  %v760_v29 = vpop.f32.mrf.mxu3 }
 0x172   : > { %v712_v31 = vadd.f32 %v1735_v43, %v711_v28 }
 0x174   : > { %v761_v32 = vadd.f32 %v760_v29, %v712_v31 }
 0x176   : > { %v787_v34 = vmax.f32 %v761_v32, 0.0 }
 0x178   : > { %v815_v36 = vpack.c.bf16 %v787_v34, %v786_v33 }
 0x179   : > { %v714_v37 = vpop.f32.mrf.mxu2  ;;  %v763_v38 = vpop.f32.mrf.mxu3 }
 0x17a   : > { %898 = vmatmul.bf16.gmra.mxu0 %v815_v36  ;;  %v715_v39 = vadd.f32 %v1735_v43, %v714_v37 }
 0x17c   : > { %v764_v49 = vadd.f32 %v763_v38, %v715_v39 }
 0x17e   : > { %v788_v45 = vmax.f32 %v764_v49, 0.0 }
 0x181   : > { %v716_v41 = vpop.f32.mrf.mxu2  ;;  %v765_v42 = vpop.f32.mrf.mxu3 }
 0x182   : > { %v717_v50 = vadd.f32 %v1735_v43, %v716_v41 }
 0x184   : > { %v766_v44 = vadd.f32 %v765_v42, %v717_v50 }
 0x186   : > { %v789_v46 = vmax.f32 %v766_v44, 0.0 }
 0x188   : > { %v816_v47 = vpack.c.bf16 %v789_v46, %v788_v45 }
 0x189   : > { %v719_v51 = vpop.f32.mrf.mxu2  ;;  %v768_v52 = vpop.f32.mrf.mxu3 }
 0x18a   : > { %903 = vmatmul.bf16.gmra.mxu0 %v816_v47  ;;  %v720_v54 = vadd.f32 %v1735_v43, %v719_v51 }
 0x18c   : > { %v769_v58 = vadd.f32 %v768_v52, %v720_v54 }
 0x18e   : > { %v790_v61 = vmax.f32 %v769_v58, 0.0 }
 0x191   : > { %v721_v56 = vpop.f32.mrf.mxu2  ;;  %v770_v57 = vpop.f32.mrf.mxu3 }
 0x192   : > { %v722_v59 = vadd.f32 %v1735_v43, %v721_v56 }
 0x194   : > { %v771_v60 = vadd.f32 %v770_v57, %v722_v59 }
 0x196   : > { %v791_v62 = vmax.f32 %v771_v60, 0.0 }
 0x198   : > { %v817_v63 = vpack.c.bf16 %v791_v62, %v790_v61 }
 0x199   : > { %v724_v0 = vpop.f32.mrf.mxu2  ;;  %v773_v1 = vpop.f32.mrf.mxu3 }
 0x19a   : > { %908 = vmatmul.bf16.gmra.mxu0 %v817_v63  ;;  %v725_v3 = vadd.f32 %v1735_v43, %v724_v0 }
 0x19c   : > { %v774_v6 = vadd.f32 %v773_v1, %v725_v3 }
 0x19e   : > { %v792_v10 = vmax.f32 %v774_v6, 0.0  ;;  %v1406_v6 = vld [vmem:[%s1846_s8] ss:$0 sm:$0xff] }
 0x1a1   : > { %v726_v4 = vpop.f32.mrf.mxu2  ;;  %v775_v8 = vpop.f32.mrf.mxu3 }
 0x1a2   : > { %v727_v7 = vadd.f32 %v1735_v43, %v726_v4 }
 0x1a4   : > { %v776_v9 = vadd.f32 %v775_v8, %v727_v7 }
 0x1a6   : > { %v793_v11 = vmax.f32 %v776_v9, 0.0 }
 0x1a8   : > { %v818_v12 = vpack.c.bf16 %v793_v11, %v792_v10 }
 0x1aa   : > { %913 = vmatmul.bf16.vlgmr.msra.gmra.mxu2 %v818_v12 }
 0x1b7   : > { %v879_v13 = vpop.f32.mrf.mxu0 }
 0x1b8   : > { %v880_v15 = vadd.f32 %v1405_v14, %v879_v13 }
 0x1ba   : > { %v919_v18 = vmax.f32 %v880_v15, 0.0 }
 0x1bf   : > { %v881_v16 = vpop.f32.mrf.mxu0 }
 0x1c0   : > { %v882_v17 = vadd.f32 %v1405_v14, %v881_v16 }
 0x1c2   : > { %v920_v19 = vmax.f32 %v882_v17, 0.0 }
 0x1c4   : > { %v952_v20 = vpack.c.bf16 %v920_v19, %v919_v18 }
 0x1c6   : > { %1019 = vmatmul.bf16.vlgmr.msrb.gmra.mxu1 %v952_v20 }
 0x1c7   : > { %v884_v43 = vpop.f32.mrf.mxu0 }
 0x1c8   : > { %v885_v21 = vadd.f32 %v1405_v14, %v884_v43 }
 0x1ca   : > { %v921_v24 = vmax.f32 %v885_v21, 0.0 }
 0x1cf   : > { %v886_v22 = vpop.f32.mrf.mxu0 }
 0x1d0   : > { %v887_v23 = vadd.f32 %v1405_v14, %v886_v22 }
 0x1d2   : > { %v922_v25 = vmax.f32 %v887_v23, 0.0 }
 0x1d4   : > { %v953_v26 = vpack.c.bf16 %v922_v25, %v921_v24 }
 0x1d6   : > { %1024 = vmatmul.bf16.gmra.mxu1 %v953_v26 }
 0x1d7   : > { %v889_v27 = vpop.f32.mrf.mxu0 }
 0x1d8   : > { %v890_v28 = vadd.f32 %v1405_v14, %v889_v27 }
 0x1da   : > { %v923_v31 = vmax.f32 %v890_v28, 0.0 }
 0x1df   : > { %v891_v29 = vpop.f32.mrf.mxu0 }
 0x1e0   : > { %v892_v30 = vadd.f32 %v1405_v14, %v891_v29 }
 0x1e2   : > { %v924_v32 = vmax.f32 %v892_v30, 0.0 }
 0x1e4   : > { %v954_v33 = vpack.c.bf16 %v924_v32, %v923_v31 }
 0x1e6   : > { %1029 = vmatmul.bf16.gmra.mxu1 %v954_v33 }
 0x1e7   : > { %v894_v34 = vpop.f32.mrf.mxu0 }
 0x1e8   : > { %v895_v35 = vadd.f32 %v1405_v14, %v894_v34 }
 0x1ea   : > { %v925_v38 = vmax.f32 %v895_v35, 0.0 }
 0x1ef   : > { %v896_v36 = vpop.f32.mrf.mxu0 }
 0x1f0   : > { %v897_v37 = vadd.f32 %v1405_v14, %v896_v36 }
 0x1f2   : > { %v926_v39 = vmax.f32 %v897_v37, 0.0 }
 0x1f4   : > { %v955_v40 = vpack.c.bf16 %v926_v39, %v925_v38 }
 0x1f6   : > { %1034 = vmatmul.bf16.gmra.mxu1 %v955_v40 }
 0x1f7   : > { %v899_v41 = vpop.f32.mrf.mxu0 }
 0x1f8   : > { %v900_v42 = vadd.f32 %v1405_v14, %v899_v41 }
 0x1fa   : > { %v927_v44 = vmax.f32 %v900_v42, 0.0 }
 0x1ff   : > { %v901_v49 = vpop.f32.mrf.mxu0 }
 0x200   : > { %v902_v50 = vadd.f32 %v1405_v14, %v901_v49 }
 0x202   : > { %v928_v45 = vmax.f32 %v902_v50, 0.0 }
 0x204   : > { %v956_v46 = vpack.c.bf16 %v928_v45, %v927_v44 }
 0x206   : > { %1039 = vmatmul.bf16.gmra.mxu1 %v956_v46 }
 0x207   : > { %v904_v47 = vpop.f32.mrf.mxu0 }
 0x208   : > { %v905_v48 = vadd.f32 %v1405_v14, %v904_v47 }
 0x20a   : > { %v929_v53 = vmax.f32 %v905_v48, 0.0 }
 0x20f   : > { %v906_v51 = vpop.f32.mrf.mxu0 }
 0x210   : > { %v907_v52 = vadd.f32 %v1405_v14, %v906_v51 }
 0x212   : > { %v930_v54 = vmax.f32 %v907_v52, 0.0 }
 0x214   : > { %v957_v55 = vpack.c.bf16 %v930_v54, %v929_v53 }
 0x216   : > { %1044 = vmatmul.bf16.gmra.mxu1 %v957_v55 }
 0x217   : > { %v909_v56 = vpop.f32.mrf.mxu0 }
 0x218   : > { %v910_v57 = vadd.f32 %v1405_v14, %v909_v56 }
 0x21a   : > { %v931_v60 = vmax.f32 %v910_v57, 0.0 }
 0x21f   : > { %v911_v58 = vpop.f32.mrf.mxu0 }
 0x220   : > { %v912_v59 = vadd.f32 %v1405_v14, %v911_v58 }
 0x222   : > { %v932_v61 = vmax.f32 %v912_v59, 0.0 }
 0x224   : > { %v958_v62 = vpack.c.bf16 %v932_v61, %v931_v60 }
 0x226   : > { %1049 = vmatmul.bf16.gmra.mxu1 %v958_v62 }
 0x22d   : > { %v914_v63 = vpop.f32.mrf.mxu2 }
 0x22e   : > { %v915_v0 = vadd.f32 %v1405_v14, %v914_v63 }
 0x230   : > { %v933_v3 = vmax.f32 %v915_v0, 0.0 }
 0x235   : > { %v916_v1 = vpop.f32.mrf.mxu2 }
 0x236   : > { %v917_v2 = vadd.f32 %v1405_v14, %v916_v1 }
 0x238   : > { %v934_v4 = vmax.f32 %v917_v2, 0.0 }
 0x23a   : > { %v959_v5 = vpack.c.bf16 %v934_v4, %v933_v3 }
 0x23c   : > { %1054 = vmatmul.bf16.gmra.mxu1 %v959_v5 }
 0x243   : > { %v1020_v7 = vpop.f32.mrf.mxu1 }
 0x244   : > { %v1021_v8 = vadd.f32 %v1406_v6, %v1020_v7 }
 0x246   : > { %1060 = vst [vmem:[%s1786_s26] sm:$0xff] %v1021_v8 }
 0x24b   : > { %v1022_v9 = vpop.f32.mrf.mxu1 }
 0x24c   : > { %v1023_v10 = vadd.f32 %v1406_v6, %v1022_v9 }
 0x24e   : > { %1061 = vst [vmem:[%s1786_s26 + $0x8] sm:$0xff] %v1023_v10 }
 0x253   : > { %v1025_v11 = vpop.f32.mrf.mxu1 }
 0x254   : > { %v1026_v12 = vadd.f32 %v1406_v6, %v1025_v11 }
 0x256   : > { %1062 = vst [vmem:[%s1786_s26 + $0x10] sm:$0xff] %v1026_v12 }
 0x25b   : > { %v1027_v13 = vpop.f32.mrf.mxu1 }
 0x25c   : > { %v1028_v14 = vadd.f32 %v1406_v6, %v1027_v13 }
 0x25e   : > { %1063 = vst [vmem:[%s1786_s26 + $0x18] sm:$0xff] %v1028_v14 }
 0x263   : > { %v1030_v15 = vpop.f32.mrf.mxu1 }
 0x264   : > { %v1031_v16 = vadd.f32 %v1406_v6, %v1030_v15 }
 0x266   : > { %1064 = vst [vmem:[%s1786_s26 + $0x20] sm:$0xff] %v1031_v16 }
 0x26b   : > { %v1032_v17 = vpop.f32.mrf.mxu1 }
 0x26c   : > { %v1033_v18 = vadd.f32 %v1406_v6, %v1032_v17 }
 0x26e   : > { %1065 = vst [vmem:[%s1786_s26 + $0x28] sm:$0xff] %v1033_v18 }
 0x273   : > { %v1035_v19 = vpop.f32.mrf.mxu1 }
 0x274   : > { %v1036_v20 = vadd.f32 %v1406_v6, %v1035_v19 }
 0x276   : > { %1066 = vst [vmem:[%s1786_s26 + $0x30] sm:$0xff] %v1036_v20 }
 0x27b   : > { %v1037_v43 = vpop.f32.mrf.mxu1 }
 0x27c   : > { %v1038_v21 = vadd.f32 %v1406_v6, %v1037_v43 }
 0x27e   : > { %1067 = vst [vmem:[%s1786_s26 + $0x38] sm:$0xff] %v1038_v21 }
 0x283   : > { %v1040_v22 = vpop.f32.mrf.mxu1 }
 0x284   : > { %v1041_v23 = vadd.f32 %v1406_v6, %v1040_v22 }
 0x286   : > { %1068 = vst [vmem:[%s1786_s26 + $0x40] sm:$0xff] %v1041_v23 }
 0x28b   : > { %v1042_v24 = vpop.f32.mrf.mxu1 }
 0x28c   : > { %v1043_v25 = vadd.f32 %v1406_v6, %v1042_v24 }
 0x28e   : > { %1069 = vst [vmem:[%s1786_s26 + $0x48] sm:$0xff] %v1043_v25 }
 0x293   : > { %v1045_v26 = vpop.f32.mrf.mxu1 }
 0x294   : > { %v1046_v27 = vadd.f32 %v1406_v6, %v1045_v26 }
 0x296   : > { %1070 = vst [vmem:[%s1786_s26 + $0x50] sm:$0xff] %v1046_v27 }
 0x29b   : > { %v1047_v28 = vpop.f32.mrf.mxu1 }
 0x29c   : > { %v1048_v29 = vadd.f32 %v1406_v6, %v1047_v28 }
 0x29e   : > { %1071 = vst [vmem:[%s1786_s26 + $0x58] sm:$0xff] %v1048_v29 }
 0x2a3   : > { %v1050_v30 = vpop.f32.mrf.mxu1 }
 0x2a4   : > { %v1051_v31 = vadd.f32 %v1406_v6, %v1050_v30 }
 0x2a6   : > { %1072 = vst [vmem:[%s1786_s26 + $0x60] sm:$0xff] %v1051_v31 }
 0x2ab   : > { %v1052_v32 = vpop.f32.mrf.mxu1 }
 0x2ac   : > { %v1053_v33 = vadd.f32 %v1406_v6, %v1052_v32 }
 0x2ae   : > { %1073 = vst [vmem:[%s1786_s26 + $0x68] sm:$0xff] %v1053_v33 }
 0x2b9   : > { %v1055_v34 = vpop.f32.mrf.mxu1 }
 0x2ba   : > { %v1056_v35 = vadd.f32 %v1406_v6, %v1055_v34 }
 0x2bc   : > { %1074 = vst [vmem:[%s1786_s26 + $0x70] sm:$0xff] %v1056_v35 }
 0x2c1   : > { %v1057_v36 = vpop.f32.mrf.mxu1 }
 0x2c2   : > { %v1058_v37 = vadd.f32 %v1406_v6, %v1057_v36 }
 0x2c4   : > { %1075 = vst [vmem:[%s1786_s26 + $0x78] sm:$0xff] %v1058_v37 }
 0x2c5   : > { %1434 = shalt.err (!%p1431_p3)
}
 0x2c6   : > { %s1471_s22 = smov 128   ;;  %s1472_s26 = smov 8  }
 0x2c7   : > { %1363 = dma.vmem_to_hbm [thread:$0]  (%p1561_p5), %s1090_s14, 2048, %s1092_s16, %s1077_s17, %s1471_s22, %s1471_s22, %s1472_s26  }
 0x2c8 PF: > { %p1369_p4 = scmp.ge.s32.totalorder %s1469_s12, 2  ;;  %s1106_s21 = sand.u32 1, %s1457_s30  }
 0x2c9   : > { %s1107_s24 = scalar_lea.sflag [#allocation3], %s1106_s21 }
 0x2ca   : > { %p1366_p7 = pnand %p1369_p4, %p1565_p6 }
 0x2cc   : > { %p1367_p8 = pneg %p1366_p7 }
 0x2ce   : > { %1452 = dma.done.wait (%p1367_p8), %s1107_s24, 2048  }
 0x2cf   : > { %1454 = vsyncadd (%p1367_p8), %s1107_s24, 4294965248  ;;  %p19_p9 = scmp.ge.s32.totalorder %s1548_s15, 4   ;;  %s1850_s30 = smov %s1461_s10 }
 0x2d0   : > { %s1851_s10 = smov %s1465_s11  ;;  %s1852_s11 = smov %s1559_s18 }
 0x2d1   : > { %s1853_s12 = smov %s1548_s15  ;;  %21 = sbr.rel (!%p19_p9) target bundleno = 3 (0x3), region = 91 }
 0x2d6   :  { %1113 = vsyncpa [#allocation3], 1 }
 0x2d7   :  { %1115 = vsyncpa [#allocation3 + $0x1], 1 }

</bundles_post_ra>
